<compile_context>
chip_gen: v5e
topology: v5e:2x2
jax: 0.10.0
libtpu: 0.0.40
codegen_flags: <defaults>
</compile_context>

<pallas_src>
import functools
import numpy as np

import jax
import jax.numpy as jnp
from jax import lax
from jax.experimental import pallas as pl
from jax.experimental.pallas import tpu as pltpu


def _to_tuple3(v):
    if isinstance(v, (tuple, list)):
        assert len(v) == 3
        return tuple(int(u) for u in v)
    return (int(v),) * 3


def _round_up(x, m):
    return ((x + m - 1) // m) * m


def quaternion_real_repr(a, b, c, d):
    """htorch-style real block representation.

    a,b,c,d: (Cin, Cout, kD, kH, kW)  ->  (4*Cin, 4*Cout, kD, kH, kW)
    """
    row0 = jnp.concatenate([a, -b, -c, -d], axis=1)
    row1 = jnp.concatenate([b,  a, -d,  c], axis=1)
    row2 = jnp.concatenate([c,  d,  a, -b], axis=1)
    row3 = jnp.concatenate([d, -c,  b,  a], axis=1)
    return jnp.concatenate([row0, row1, row2, row3], axis=0)


# ----------------------------- Pallas kernel -------------------------------- #

def _qconvt_gemm_kernel(p_ref, w_ref, b_ref, o_ref):
    """Fused (im2col GEMM + bias) for one M-tile.

    p_ref: (TM, K_pad)      bf16 im2col patch tile (lane-dense K)
    w_ref: (K_pad, C_pad)   bf16 reshaped/flipped weight (resident across grid)
    b_ref: (1, C_pad)       f32 bias
    o_ref: (TM, C_pad)      f32 output tile (lane-dense, unmasked stores)
    """
    acc = jnp.dot(p_ref[...], w_ref[...], preferred_element_type=jnp.float32)
    o_ref[...] = (acc + b_ref[...]).astype(o_ref.dtype)


def q_conv_transpose3d(x, weight, bias, stride=1, padding=0, output_padding=0,
                       groups=1, dilation=1, tile_m=256,
                       compute_dtype=jnp.bfloat16):
    """ConvTranspose3d, PyTorch semantics.

    x:      (N, Cin4, D, H, W)            NCDHW
    weight: (Cin4, Cout4, kD, kH, kW)     PyTorch ConvTranspose3d weight layout
    bias:   (Cout4,)
    returns (N, Cout4, Dout, Hout, Wout)  float32
    """
    assert groups == 1  # TODO(synk): groups > 1 not implemented
    s = _to_tuple3(stride)
    p = _to_tuple3(padding)
    op = _to_tuple3(output_padding)
    d = _to_tuple3(dilation)

    N, Cin4, D, H, W = x.shape
    _, Cout4, kD, kH, kW = weight.shape
    k = (kD, kH, kW)

    # ---- wrapper-side layout plumbing (plain JAX): zero-insertion, padding,
    #      kernel flip, im2col, lane padding ---------------------------------
    x_ndhwc = jnp.transpose(x, (0, 2, 3, 4, 1))

    Dd, Hd, Wd = [(sz - 1) * st + 1 for sz, st in zip((D, H, W), s)]
    # TODO(synk): polyphase decomposition for stride>1 would avoid materializing
    # the zero-inserted volume and skip the all-zero taps on the MXU.
    x_dil = jnp.zeros((N, Dd, Hd, Wd, Cin4), x_ndhwc.dtype)
    x_dil = x_dil.at[:, ::s[0], ::s[1], ::s[2], :].set(x_ndhwc)

    pads = []
    for ax in range(3):
        lo = d[ax] * (k[ax] - 1) - p[ax]
        hi = lo + op[ax]
        assert lo >= 0 and hi >= 0, "padding > dilation*(kernel-1) not supported"
        pads.append((lo, hi))
    x_pad = jnp.pad(x_dil, ((0, 0), pads[0], pads[1], pads[2], (0, 0)))
    x_pad = x_pad.astype(compute_dtype)          # bf16 MXU inputs
    Dp, Hp, Wp = x_pad.shape[1:4]

    Dout = Dp - d[0] * (kD - 1)
    Hout = Hp - d[1] * (kH - 1)
    Wout = Wp - d[2] * (kW - 1)

    # im2col: patches[(n,od,oh,ow), ((kd,kh,kw),ci)]  (tap-major, channel-minor)
    taps = []
    for kd in range(kD):
        for kh in range(kH):
            for kw in range(kW):
                taps.append(lax.slice(
                    x_pad,
                    (0, kd * d[0], kh * d[1], kw * d[2], 0),
                    (N, kd * d[0] + Dout, kh * d[1] + Hout,
                     kw * d[2] + Wout, Cin4)))
    patches = jnp.stack(taps, axis=-2)           # (N, Dout, Hout, Wout, T, Cin4)
    K = kD * kH * kW * Cin4
    M = N * Dout * Hout * Wout
    patches = patches.reshape(M, K)

    # weight: flip spatially, reorder to (K, Cout4) matching the patch K ordering.
    w_flip = weight[:, :, ::-1, ::-1, ::-1]
    w2d = jnp.transpose(w_flip, (2, 3, 4, 0, 1)).reshape(K, Cout4)

    # lane/tile padding: K and Cout4 up to multiples of 128, M up to tile_m.
    K_pad = _round_up(K, 128)
    C_pad = _round_up(Cout4, 128)
    M_pad = _round_up(M, tile_m)

    patches = jnp.pad(patches, ((0, M_pad - M), (0, K_pad - K)))
    w2d = jnp.pad(w2d, ((0, K_pad - K), (0, C_pad - Cout4))).astype(compute_dtype)
    b2d = jnp.pad(bias.astype(jnp.float32), (0, C_pad - Cout4)).reshape(1, C_pad)

    grid = (M_pad // tile_m,)
    out_flat = pl.pallas_call(
        _qconvt_gemm_kernel,
        out_shape=jax.ShapeDtypeStruct((M_pad, C_pad), jnp.float32),
        grid_spec=pltpu.PrefetchScalarGridSpec(
            num_scalar_prefetch=0,
            grid=grid,
            in_specs=[
                # per-step im2col tile: (tile_m, K_pad), K_pad >= 128 in lanes
                pl.BlockSpec((tile_m, K_pad), lambda i: (i, 0)),
                # small reshaped weight, constant block index -> fetched once
                pl.BlockSpec((K_pad, C_pad), lambda i: (0, 0)),
                # bias
                pl.BlockSpec((1, C_pad), lambda i: (0, 0)),
            ],
            out_specs=pl.BlockSpec((tile_m, C_pad), lambda i: (i, 0)),
        ),
        compiler_params=pltpu.CompilerParams(
            dimension_semantics=("parallel",)),
    )(patches, w2d, b2d)

    out = out_flat[:M, :Cout4].reshape(N, Dout, Hout, Wout, Cout4)
    return jnp.transpose(out, (0, 4, 1, 2, 3))   # back to NCDHW


# ------------------------------- Module port --------------------------------- #

class QAutogradConvTranspose3d:
    """JAX/Pallas port of htorch.layers.QAutogradConvTranspose3d (forward only)."""

    def __init__(self, in_channels, out_channels, kernel_size, stride=1, padding=0,
                 output_padding=0, groups=1, bias=True, dilation=1, spinor=False,
                 key=None):
        assert groups == 1   # TODO(synk): groups > 1 not implemented
        assert not spinor    # TODO(synk): spinor (_real_rot_repr) variant not implemented
        self.in_channels = in_channels
        self.out_channels = out_channels
        self.kernel_size = _to_tuple3(kernel_size)
        self.stride = stride
        self.padding = padding
        self.output_padding = output_padding
        self.groups = groups
        self.dilation = dilation

        # Deterministic synthetic quaternion init (stand-in for initialize_conv).
        key = jax.random.PRNGKey(0) if key is None else key
        kr, ki, kj, kk = jax.random.split(key, 4)
        kD, kH, kW = self.kernel_size
        fan = in_channels * kD * kH * kW
        scale = 1.0 / np.sqrt(2.0 * fan)
        shape = (in_channels, out_channels, kD, kH, kW)
        a = scale * jax.random.normal(kr, shape, jnp.float32)
        b = scale * jax.random.normal(ki, shape, jnp.float32)
        c = scale * jax.random.normal(kj, shape, jnp.float32)
        dq = scale * jax.random.normal(kk, shape, jnp.float32)
        # (4*Cin, 4*Cout, kD, kH, kW) real representation, ConvTranspose3d layout
        self.weight = quaternion_real_repr(a, b, c, dq)
        self.bias = jnp.zeros((4 * out_channels,), jnp.float32) if bias else None

    def __call__(self, x):
        bias = (self.bias if self.bias is not None
                else jnp.zeros((self.weight.shape[1],), jnp.float32))
        return q_conv_transpose3d(x, self.weight, bias, self.stride, self.padding,
                                  self.output_padding, self.groups, self.dilation)


# ------------------------------- Reference ----------------------------------- #

def reference_conv_transpose3d(x, weight, bias, stride, padding, output_padding,
                               dilation, compute_dtype=jnp.float32):
    s = _to_tuple3(stride); p = _to_tuple3(padding)
    op = _to_tuple3(output_padding); d = _to_tuple3(dilation)
    kD, kH, kW = weight.shape[2:]
    x_ndhwc = jnp.transpose(x, (0, 2, 3, 4, 1)).astype(compute_dtype)
    w_flip = weight[:, :, ::-1, ::-1, ::-1]
    w_dhwio = jnp.transpose(w_flip, (2, 3, 4, 0, 1)).astype(compute_dtype)
    pads = [(d[a] * (kk - 1) - p[a], d[a] * (kk - 1) - p[a] + op[a])
            for a, kk in enumerate((kD, kH, kW))]
    out = lax.conv_general_dilated(
        x_ndhwc, w_dhwio, window_strides=(1, 1, 1), padding=pads,
        lhs_dilation=s, rhs_dilation=d,
        dimension_numbers=("NDHWC", "DHWIO", "NDHWC"),
        preferred_element_type=jnp.float32,
        precision=lax.Precision.HIGHEST)
    out = out + bias.astype(jnp.float32)
    return jnp.transpose(out, (0, 4, 1, 2, 3))


# --------------------------------- Main --------------------------------------- #

if __name__ == "__main__":
    key = jax.random.PRNGKey(0)
    kmod, kx = jax.random.split(key)

    in_channels, out_channels = 2, 3          # quaternion channels
    N, D, H, W = 2, 5, 5, 5
    stride, padding, output_padding, dilation = 2, 1, 1, 1

    module = QAutogradConvTranspose3d(in_channels, out_channels, kernel_size=3,
                                      stride=stride, padding=padding,
                                      output_padding=output_padding, bias=True,
                                      dilation=dilation, key=kmod)

    # input: (N, 4*in_channels, D, H, W)  — 4 real components per quaternion channel
    x = jax.random.normal(kx, (N, 4 * in_channels, D, H, W), jnp.float32)

    out = module(x)
    out = jax.block_until_ready(out)

    # Reference with the same bf16-in / f32-accumulate numerics as the kernel.
    ref = reference_conv_transpose3d(x, module.weight, module.bias, stride, padding,
                                     output_padding, dilation,
                                     compute_dtype=jnp.bfloat16)
    ref = jax.block_until_ready(ref)

    assert out.shape == ref.shape, (out.shape, ref.shape)
    if not np.allclose(np.asarray(out), np.asarray(ref), rtol=2e-3, atol=2e-3):
        raise AssertionError("Pallas kernel does not match reference conv_transpose3d")

    print("KERNEL_OK")
</pallas_src>

<mosaic_0001>
module attributes {stable_mosaic.version = 11 : i64} {
  func.func @_qconvt_gemm_kernel(%arg0: i32, %arg1: memref<256x256xbf16, #tpu.memory_space<vmem>>, %arg2: memref<256x128xbf16, #tpu.memory_space<vmem>>, %arg3: memref<1x128xf32, #tpu.memory_space<vmem>>, %arg4: memref<256x128xf32, #tpu.memory_space<vmem>>) attributes {dimension_semantics = [#tpu.dimension_semantics<parallel>], iteration_bounds = array<i64: 8>, scalar_prefetch = 0 : i64, scratch_operands = 0 : i64, tpu.core_type = #tpu.core_type<tc>, window_params = [{transform_indices = @transform_0, window_bounds = array<i64: 256, 256>}, {pipeline_mode = #tpu.pipeline_mode<synchronous>, transform_indices = @transform_1, window_bounds = array<i64: 256, 128>}, {pipeline_mode = #tpu.pipeline_mode<synchronous>, transform_indices = @transform_2, window_bounds = array<i64: 1, 128>}, {transform_indices = @transform_3, window_bounds = array<i64: 256, 128>}]} {
    %c0 = arith.constant 0 : index
    %c0_0 = arith.constant 0 : index
    %0 = vector.load %arg1[%c0, %c0_0] : memref<256x256xbf16, #tpu.memory_space<vmem>>, vector<256x256xbf16>
    %c0_1 = arith.constant 0 : index
    %c0_2 = arith.constant 0 : index
    %1 = vector.load %arg2[%c0_1, %c0_2] : memref<256x128xbf16, #tpu.memory_space<vmem>>, vector<256x128xbf16>
    %cst = arith.constant dense<0.000000e+00> : vector<256x128xf32>
    %2 = tpu.matmul %0, %1, %cst {dimension_numbers = #tpu.dot_dimension_numbers<[1], [0], [0], [1], [0, 0, 1, 1], [], []>} : vector<256x256xbf16>, vector<256x128xbf16>, vector<256x128xf32> -> vector<256x128xf32>
    %c0_3 = arith.constant 0 : index
    %c0_4 = arith.constant 0 : index
    %3 = vector.load %arg3[%c0_3, %c0_4] : memref<1x128xf32, #tpu.memory_space<vmem>>, vector<1x128xf32>
    %4 = vector.broadcast %3 : vector<1x128xf32> to vector<256x128xf32>
    %5 = arith.addf %2, %4 : vector<256x128xf32>
    %c0_5 = arith.constant 0 : index
    %c0_6 = arith.constant 0 : index
    %6 = vector.load %arg4[%c0_5, %c0_6] : memref<256x128xf32, #tpu.memory_space<vmem>>, vector<256x128xf32>
    tpu.vector_store %arg4[%c0_5, %c0_6], %5 {strides = array<i32>} : memref<256x128xf32, #tpu.memory_space<vmem>>, vector<256x128xf32>,
    return
  }
  func.func @transform_0(%arg0: i32) -> (i32, i32) {
    %c0_i32 = arith.constant 0 : i32
    %c0_i32_0 = arith.constant 0 : i32
    return %arg0, %c0_i32 : i32, i32
  }
  func.func @transform_1(%arg0: i32) -> (i32, i32) {
    %c0_i32 = arith.constant 0 : i32
    %c0_i32_0 = arith.constant 0 : i32
    %c0_i32_1 = arith.constant 0 : i32
    return %c0_i32, %c0_i32_0 : i32, i32
  }
  func.func @transform_2(%arg0: i32) -> (i32, i32) {
    %c0_i32 = arith.constant 0 : i32
    %c0_i32_0 = arith.constant 0 : i32
    %c0_i32_1 = arith.constant 0 : i32
    return %c0_i32, %c0_i32_0 : i32, i32
  }
  func.func @transform_3(%arg0: i32) -> (i32, i32) {
    %c0_i32 = arith.constant 0 : i32
    %c0_i32_0 = arith.constant 0 : i32
    return %arg0, %c0_i32 : i32, i32
  }
}

</mosaic_0001>

<bundles_post_ra>
// kernel: tpu_custom_call.1
= control target key start
LH: loop header
LB: loop body
LE: loop exit
PB: predicated region body
PF: predicated region fallthrough
CT: control target
= control target key end

     0   :  { %8 = vsyncpa [#allocation3], 0  ;;  %s1623_s0 = inlined_call_operand.hbm [shape: bf16[2048,256], index: 0, kind: input, shape index: {}]   ;;  %s1624_s1 = inlined_call_operand.hbm [shape: bf16[256,128], index: 1, kind: input, shape index: {}]   ;;  %s1625_s2 = inlined_call_operand.vmem [shape: f32[1,128], index: 2, kind: input, shape index: {}]   ;;  %s1626_s3 = inlined_call_operand.hbm [shape: f32[2048,128], index: 3, kind: output, shape index: {}]  }
   0x1   :  { %10 = vsyncpa [#allocation3 + $0x1], 0 }
   0x2   :  { %11 = vsyncpa [#allocation6], 0 }
   0x3   :  { %12 = vsyncpa [#allocation4], 0 }
   0x4   :  { %14 = vsyncpa [#allocation4 + $0x1], 0  ;;  %s1343_s12 = smov 0   ;;  %s1345_s13 = smov 0  }
   0x5   :  { %s1347_s14 = smov 0   ;;  %s1349_s15 = smov 0  }
   0x6 LB: > { %s1364_s16 = sadd.s32 4294967295, %s1314_s15   ;;  %s844_s17 = sadd.s32 4294967294, %s1314_s15   ;;  %s1314_s15 = sphi %s1349_s15, %s1635_s15   ;;  %s1310_s14 = sphi %s1347_s14, %s1634_s14   ;;  %s1306_s13 = sphi %s1345_s13, %s1633_s13   ;;  %s1302_s12 = sphi %s1343_s12, %s1632_s12  }
   0x7   : > { %p40_p0 = scmp.ne.s32.totalorder %s1306_s13, %s1302_s12  ;;  %p41_p1 = scmp.eq.s32.totalorder %s1364_s16, 0 }
   0x8   : > { %p106_p2 = scmp.eq.s32.totalorder %s1364_s16, 7  ;;  %p112_p3 = scmp.eq.s32.totalorder %s844_s17, 7 }
   0x9   : > { %p1373_p4 = por %p41_p1, %p40_p0  ;;  %p845_p5 = scmp.ge.s32.totalorder %s1314_s15, 1 }
   0xa   : > { %p1378_p6 = por %p112_p3, %p40_p0  ;;  %p119_p7 = scmp.lt.s32.totalorder %s1314_s15, 9 }
   0xb   : > { %s130_s22 = sshll.u32 %s1624_s1, 4  ;;  %s1316_s24 = smov [#allocation5]   ;;  %s131_s22 = int_to_ptr.hbm [resolvable:$true] %s130_s22 }
   0xc   : > { %p1386_p8 = pnand %p845_p5, %p119_p7  ;;  %s132_s25 = sshll.u32 %s1316_s24, 4  ;;  %s133_s25 = int_to_ptr.vmem [resolvable:$true] %s132_s25 }
   0xd   : > { %s1395_s26 = sadd.s32 1, %s1314_s15   ;;  %s1317_s27 = smov 64  }
   0xe   : > { %p1128_p9 = pneg %p1386_p8  ;;  %s1318_s28 = smov 4  }
   0xf   : > { %s24_s29 = ssub.s32 %s1314_s15, %s1395_s26  ;;  %s27_s30 = sadd.s32 1, %s1310_s14 }
  0x10   : > { %p1129_p10 = pnand %p1128_p9, %p41_p1  ;;  %p25_p11 = scmp.eq.s32.totalorder %s24_s29, 0 }
  0x11   : > { %p34_p12 = scmp.ne.s32.totalorder %s1310_s14, %s1306_s13  ;;  %p35_p13 = scmp.eq.s32.totalorder %s1314_s15, 0 }
  0x12   : > { %1131 = dma.hbm_to_vmem [thread:$0]  (!%p1129_p10), %s131_s22, 2048, %s133_s25, [#allocation6], %s1317_s27, %s1317_s27, %s1318_s28  }
  0x13   : > { %p1141_p0 = scmp.lt.s32.totalorder %s1314_s15, 8  ;;  %p36_p3 = por %p35_p13, %p34_p12 }
  0x14   : > { %s1405_s4 = scalar_select %p25_p11, %s1310_s14, %s27_s30  }
  0x15   : > { %p1409_p5 = por %p106_p2, %p34_p12  ;;  %s149_s6 = sand.u32 1, %s1310_s14  }
  0x16   : > { %s1054_s7 = sshll.u32 %s1314_s15, 8  ;;  %s848_s8 = sshll.u32 %s149_s6, 8 }
  0x17   : > { %s159_s11 = scalar_lea.hbm %s1623_s0, %s1054_s7  ;;  %s153_s20 = scalar_lea.vmem [#allocation2], %s848_s8 }
  0x18   : > { %s160_s17 = sshll.u32 %s159_s11, 4  ;;  %s162_s21 = sshll.u32 %s153_s20, 4  ;;  %s161_s17 = int_to_ptr.hbm [resolvable:$true] %s160_s17  ;;  %s163_s21 = int_to_ptr.vmem [resolvable:$true] %s162_s21 }
  0x19   : > { %p1420_p7 = pnand %p1141_p0, %p36_p3  ;;  %s150_s24 = scalar_lea.sflag [#allocation3], %s149_s6 }
  0x1a   : > { %s1214_s25 = sshra.s32 %s161_s17, 4  ;;  %s1221_s30 = scalar_lea.hbm %s1623_s0, 2048  ;;  %s1215_s25 = int_to_ptr.hbm [resolvable:$true] %s1214_s25 }
  0x1b   : > { %s1216_s27 = scalar_lea.hbm %s1215_s25, 256  ;;  %p1218_p9 = pneg %p1420_p7 }
  0x1c   : > { %p1217_p2 = scmp.ne.s32.totalorder %s1215_s25, %s1216_s27  ;;  %p1222_p12 = scmp.lt.s32.totalorder %s1215_s25, %s1623_s0 }
  0x1d   : > { %p1223_p13 = scmp.lt.s32.totalorder %s1221_s30, %s1216_s27 }
  0x1e   : > { %p1219_p10 = pnand %p1218_p9, %p1217_p2 }
  0x1f   : > { %p1224_p0 = por %p1223_p13, %p1222_p12 }
  0x20   : > { %p1220_p11 = pneg %p1219_p10 }
  0x22   : > { %p1225_p3 = pnand %p1224_p0, %p1220_p11 }
  0x24   : > { %1228 = shalt.err (!%p1225_p3)
}
  0x25   : > { %s1319_s6 = smov 128   ;;  %s1320_s9 = smov 8  }
  0x26   : > { %1135 = dma.hbm_to_vmem [thread:$0]  (!%p1420_p7), %s161_s17, 4096, %s163_s21, %s150_s24, %s1319_s6, %s1319_s6, %s1320_s9  }
  0x27   : > { %174 = sbr.rel (%p1386_p8) target bundleno = 339 (0x153), region = 32  ;;  %s1437_s10 = sand.u32 (!%p1386_p8), 1, %s1306_s13  }
  0x28   : > { %s853_s11 = sshll.u32 (!%p1386_p8), %s1437_s10, 8  ;;  %s177_s20 = scalar_lea.sflag (!%p1386_p8), [#allocation3], %s1437_s10 }
  0x29   : > { %s1443_s25 = scalar_lea.vmem (!%p1386_p8), [#allocation2], %s853_s11 }
  0x2c   : > { %1289 = dma.done.wait (%p1373_p4), %s177_s20, 4096  }
  0x2d   : > { %1291 = vsyncadd (%p1373_p4), %s177_s20, 4294963200 }
  0x2e   : > { %1293 = dma.done.wait (%p41_p1), [#allocation6], 2048  }
  0x2f   : > { %1295 = vsyncadd (%p41_p1), [#allocation6], 4294965248  ;;  %v1094_v0 = vld [vmem:[#allocation5 + $0x38] sm:$0xff]  ;;  %v1093_v2 = vld [vmem:[#allocation5 + $0x30] sm:$0xff]  ;;  %s1525_s17 = scalar_lea.vmem [#allocation7], %s853_s11  ;;  %s1103_s21 = sshll.u32 %s1364_s16, 8 }
  0x30   : > { %v1102_v1 = vld [vmem:[#allocation5 + $0x78] sm:$0xff]  ;;  %535 = vmatpush.bf16.msra.mxu0 %v1094_v0  ;;  %1104 = vmatpush.bf16.msra.mxu2 %v1094_v0  ;;  %v1101_v3 = vld [vmem:[#allocation5 + $0x70] sm:$0xff]  ;;  %v1092_v4 = vld [vmem:[#allocation5 + $0x28] sm:$0xff]  ;;  %s757_s27 = scalar_lea.hbm %s1626_s3, %s1103_s21  ;;  %s758_s28 = sshll.u32 %s1525_s17, 4  ;;  %s759_s28 = int_to_ptr.vmem [resolvable:$true] %s758_s28 }
  0x31   : > { %624 = vmatpush.bf16.msra.mxu1 %v1102_v1  ;;  %1112 = vmatpush.bf16.msra.mxu3 %v1102_v1  ;;  %v1100_v5 = vld [vmem:[#allocation5 + $0x68] sm:$0xff]  ;;  %v1091_v6 = vld [vmem:[#allocation5 + $0x20] sm:$0xff]  ;;  %v1090_v8 = vld [vmem:[#allocation5 + $0x18] sm:$0xff]  ;;  %s760_s29 = sshll.u32 %s757_s27, 4  ;;  %s746_s16 = scalar_lea.sflag [#allocation4], %s1437_s10  ;;  %s761_s29 = int_to_ptr.hbm [resolvable:$true] %s760_s29 }
  0x32   : > { %v1099_v7 = vld [vmem:[#allocation5 + $0x60] sm:$0xff]  ;;  %v1098_v9 = vld [vmem:[#allocation5 + $0x58] sm:$0xff]  ;;  %v1089_v10 = vld [vmem:[#allocation5 + $0x10] sm:$0xff]  ;;  %s1258_s30 = sshra.s32 %s761_s29, 4  ;;  %s1264_s9 = scalar_lea.hbm %s1626_s3, 2048  ;;  %s1259_s30 = int_to_ptr.hbm [resolvable:$true] %s1258_s30 }
  0x33   : > { %v1097_v11 = vld [vmem:[#allocation5 + $0x50] sm:$0xff]  ;;  %v1088_v12 = vld [vmem:[#allocation5 + $0x8] sm:$0xff]  ;;  %v1087_v14 = vld [vmem:[#allocation5] sm:$0xff]  ;;  %s1260_s7 = scalar_lea.hbm %s1259_s30, 256  ;;  %p1265_p7 = scmp.lt.s32.totalorder %s1259_s30, %s1626_s3 }
  0x34   : > { %536 = vmatpush.bf16.msra.mxu0 %v1093_v2  ;;  %1105 = vmatpush.bf16.msra.mxu2 %v1093_v2  ;;  %v1096_v13 = vld [vmem:[#allocation5 + $0x48] sm:$0xff]  ;;  %v1095_v15 = vld [vmem:[#allocation5 + $0x40] sm:$0xff]  ;;  %v866_v28 = vld [vmem:[%s1443_s25 + $0x10] sm:$0xf]  ;;  %p1261_p1 = scmp.ne.s32.totalorder %s1259_s30, %s1260_s7  ;;  %p1266_p2 = scmp.lt.s32.totalorder %s1264_s9, %s1260_s7 }
  0x35   : > { %625 = vmatpush.bf16.msra.mxu1 %v1101_v3  ;;  %1113 = vmatpush.bf16.msra.mxu3 %v1101_v3  ;;  %v858_v16 = vld [vmem:[%s1443_s25] sm:$0xf]  ;;  %v1056_v17 = vld [vmem:[%s1443_s25 + $0x4] sm:$0xf0]  ;;  %v1055_v20 = vld [vmem:[%s1443_s25 + $0x4] sm:$0xf] }
  0x36   : > { %v922_v18 = vld [vmem:[%s1443_s25 + $0x80] sm:$0xf]  ;;  %v1072_v19 = vld [vmem:[%s1443_s25 + $0x84] sm:$0xf0]  ;;  %v860_v21 = vld [vmem:[%s1443_s25 + $0x8] sm:$0xf0]  ;;  %v859_v24 = vor.u32 %v1056_v17, %v858_v16  ;;  %p1262_p4 = pnand %p1261_p1, %p1409_p5  ;;  %p1267_p9 = por %p1266_p2, %p1265_p7 }
  0x37   : > { %v1071_v22 = vld [vmem:[%s1443_s25 + $0x84] sm:$0xf]  ;;  %v924_v23 = vld [vmem:[%s1443_s25 + $0x88] sm:$0xf0]  ;;  %v923_v25 = vor.u32 %v1072_v19, %v922_v18  ;;  %v863_v26 = vor.u32 %v1055_v20, %v860_v21  ;;  %v1058_v29 = vld [vmem:[%s1443_s25 + $0x14] sm:$0xf0] }
  0x38   : > { %537 = vmatpush.bf16.msra.mxu0 %v1092_v4  ;;  %1106 = vmatpush.bf16.msra.mxu2 %v1092_v4  ;;  %v927_v27 = vor.u32 %v1071_v22, %v924_v23  ;;  %v930_v30 = vld [vmem:[%s1443_s25 + $0x90] sm:$0xf]  ;;  %v1074_v31 = vld [vmem:[%s1443_s25 + $0x94] sm:$0xf0]  ;;  %v1057_v32 = vld [vmem:[%s1443_s25 + $0x14] sm:$0xf]  ;;  %v867_v36 = vor.u32 %v1058_v29, %v866_v28  ;;  %p1263_p8 = pneg %p1262_p4 }
  0x39   : > { %626 = vmatpush.bf16.msra.mxu1 %v1100_v5  ;;  %1114 = vmatpush.bf16.msra.mxu3 %v1100_v5  ;;  %v868_v33 = vld [vmem:[%s1443_s25 + $0x18] sm:$0xf0]  ;;  %v1073_v34 = vld [vmem:[%s1443_s25 + $0x94] sm:$0xf]  ;;  %v931_v37 = vor.u32 %v1074_v31, %v930_v30  ;;  %v874_v40 = vld [vmem:[%s1443_s25 + $0x20] sm:$0xf] }
  0x3a   : > { %v932_v35 = vld [vmem:[%s1443_s25 + $0x98] sm:$0xf0]  ;;  %v871_v38 = vor.u32 %v1057_v32, %v868_v33  ;;  %v1060_v41 = vld [vmem:[%s1443_s25 + $0x24] sm:$0xf0]  ;;  %v938_v42 = vld [vmem:[%s1443_s25 + $0xa0] sm:$0xf]  ;;  %p1268_p10 = pnand %p1267_p9, %p1263_p8 }
  0x3b   : > { %v935_v39 = vor.u32 %v1073_v34, %v932_v35  ;;  %v1076_v43 = vld [vmem:[%s1443_s25 + $0xa4] sm:$0xf0]  ;;  %v1059_v44 = vld [vmem:[%s1443_s25 + $0x24] sm:$0xf]  ;;  %v876_v45 = vld [vmem:[%s1443_s25 + $0x28] sm:$0xf0]  ;;  %v875_v48 = vor.u32 %v1060_v41, %v874_v40 }
  0x3c   : > { %538 = vmatpush.bf16.msra.mxu0 %v1091_v6  ;;  %1107 = vmatpush.bf16.msra.mxu2 %v1091_v6  ;;  %v1075_v46 = vld [vmem:[%s1443_s25 + $0xa4] sm:$0xf]  ;;  %v940_v47 = vld [vmem:[%s1443_s25 + $0xa8] sm:$0xf0]  ;;  %v939_v49 = vor.u32 %v1076_v43, %v938_v42  ;;  %v879_v50 = vor.u32 %v1059_v44, %v876_v45  ;;  %v882_v52 = vld [vmem:[%s1443_s25 + $0x30] sm:$0xf] }
  0x3d   : > { %627 = vmatpush.bf16.msra.mxu1 %v1099_v7  ;;  %1115 = vmatpush.bf16.msra.mxu3 %v1099_v7  ;;  %v943_v51 = vor.u32 %v1075_v46, %v940_v47  ;;  %v1062_v53 = vld [vmem:[%s1443_s25 + $0x34] sm:$0xf0]  ;;  %v946_v54 = vld [vmem:[%s1443_s25 + $0xb0] sm:$0xf]  ;;  %v1061_v56 = vld [vmem:[%s1443_s25 + $0x34] sm:$0xf] }
  0x3e   : > { %v1078_v55 = vld [vmem:[%s1443_s25 + $0xb4] sm:$0xf0]  ;;  %v884_v57 = vld [vmem:[%s1443_s25 + $0x38] sm:$0xf0]  ;;  %v1077_v58 = vld [vmem:[%s1443_s25 + $0xb4] sm:$0xf]  ;;  %v883_v60 = vor.u32 %v1062_v53, %v882_v52 }
  0x3f   : > { %v948_v59 = vld [vmem:[%s1443_s25 + $0xb8] sm:$0xf0]  ;;  %v947_v61 = vor.u32 %v1078_v55, %v946_v54  ;;  %v887_v62 = vor.u32 %v1061_v56, %v884_v57  ;;  %v890_v0 = vld [vmem:[%s1443_s25 + $0x40] sm:$0xf]  ;;  %v1064_v1 = vld [vmem:[%s1443_s25 + $0x44] sm:$0xf0] }
  0x40   : > { %539 = vmatpush.bf16.msra.mxu0 %v1090_v8  ;;  %1108 = vmatpush.bf16.msra.mxu2 %v1090_v8  ;;  %v951_v63 = vor.u32 %v1077_v58, %v948_v59  ;;  %v954_v2 = vld [vmem:[%s1443_s25 + $0xc0] sm:$0xf]  ;;  %v1080_v3 = vld [vmem:[%s1443_s25 + $0xc4] sm:$0xf0]  ;;  %v1063_v4 = vld [vmem:[%s1443_s25 + $0x44] sm:$0xf]  ;;  %v891_v8 = vor.u32 %v1064_v1, %v890_v0 }
  0x41   : > { %628 = vmatpush.bf16.msra.mxu1 %v1098_v9  ;;  %1116 = vmatpush.bf16.msra.mxu3 %v1098_v9  ;;  %v892_v5 = vld [vmem:[%s1443_s25 + $0x48] sm:$0xf0]  ;;  %v1079_v6 = vld [vmem:[%s1443_s25 + $0xc4] sm:$0xf]  ;;  %v955_v9 = vor.u32 %v1080_v3, %v954_v2  ;;  %v1065_v16 = vld [vmem:[%s1443_s25 + $0x54] sm:$0xf] }
  0x42   : > { %v956_v7 = vld [vmem:[%s1443_s25 + $0xc8] sm:$0xf0]  ;;  %v900_v17 = vld [vmem:[%s1443_s25 + $0x58] sm:$0xf0]  ;;  %v1081_v18 = vld [vmem:[%s1443_s25 + $0xd4] sm:$0xf] }
  0x43   : > { %v964_v19 = vld [vmem:[%s1443_s25 + $0xd8] sm:$0xf0]  ;;  %v903_v22 = vor.u32 %v1065_v16, %v900_v17  ;;  %v1067_v28 = vld [vmem:[%s1443_s25 + $0x64] sm:$0xf]  ;;  %v908_v29 = vld [vmem:[%s1443_s25 + $0x68] sm:$0xf0] }
  0x44   : > { %540 = vmatpush.bf16.msra.mxu0 %v1089_v10  ;;  %1109 = vmatpush.bf16.msra.mxu2 %v1089_v10  ;;  %v895_v10 = vor.u32 %v1063_v4, %v892_v5  ;;  %v967_v23 = vor.u32 %v1081_v18, %v964_v19  ;;  %v1083_v30 = vld [vmem:[%s1443_s25 + $0xe4] sm:$0xf]  ;;  %v972_v31 = vld [vmem:[%s1443_s25 + $0xe8] sm:$0xf0]  ;;  %v911_v34 = vor.u32 %v1067_v28, %v908_v29  ;;  %v1069_v40 = vld [vmem:[%s1443_s25 + $0x74] sm:$0xf] }
  0x45   : > { %629 = vmatpush.bf16.msra.mxu1 %v1097_v11  ;;  %1117 = vmatpush.bf16.msra.mxu3 %v1097_v11  ;;  %v959_v11 = vor.u32 %v1079_v6, %v956_v7  ;;  %v975_v35 = vor.u32 %v1083_v30, %v972_v31  ;;  %v916_v41 = vld [vmem:[%s1443_s25 + $0x78] sm:$0xf0]  ;;  %v1085_v42 = vld [vmem:[%s1443_s25 + $0xf4] sm:$0xf] }
  0x46   : > { %v980_v43 = vld [vmem:[%s1443_s25 + $0xf8] sm:$0xf0]  ;;  %v919_v46 = vor.u32 %v1069_v40, %v916_v41 }
  0x47   : > { %v983_v47 = vor.u32 %v1085_v42, %v980_v43 }
  0x48   : > { %541 = vmatpush.bf16.msra.mxu0 %v1088_v12  ;;  %1110 = vmatpush.bf16.msra.mxu2 %v1088_v12  ;;  %v898_v12 = vld [vmem:[%s1443_s25 + $0x50] sm:$0xf] }
  0x49   : > { %630 = vmatpush.bf16.msra.mxu1 %v1096_v13  ;;  %1118 = vmatpush.bf16.msra.mxu3 %v1096_v13  ;;  %v1066_v13 = vld [vmem:[%s1443_s25 + $0x54] sm:$0xf0] }
  0x4a   : > { %v899_v20 = vor.u32 %v1066_v13, %v898_v12 }
  0x4c   : > { %542 = vmatpush.bf16.msra.mxu0 %v1087_v14  ;;  %1111 = vmatpush.bf16.msra.mxu2 %v1087_v14  ;;  %v962_v14 = vld [vmem:[%s1443_s25 + $0xd0] sm:$0xf] }
  0x4d   : > { %631 = vmatpush.bf16.msra.mxu1 %v1095_v15  ;;  %1119 = vmatpush.bf16.msra.mxu3 %v1095_v15  ;;  %v1082_v15 = vld [vmem:[%s1443_s25 + $0xd4] sm:$0xf0] }
  0x4e   : > { %v963_v21 = vor.u32 %v1082_v15, %v962_v14 }
  0x4f   : > { %543 = vmatmul.bf16.vlgmr.msra.gmra.mxu0 %v859_v24  ;;  %583 = vmatmul.bf16.vlgmr.msra.gmra.mxu2 %v923_v25  ;;  %v906_v24 = vld [vmem:[%s1443_s25 + $0x60] sm:$0xf]  ;;  %v1068_v25 = vld [vmem:[%s1443_s25 + $0x64] sm:$0xf0] }
  0x50   : > { %632 = vmatmul.bf16.vlgmr.msra.gmra.mxu1 %v863_v26  ;;  %672 = vmatmul.bf16.vlgmr.msra.gmra.mxu3 %v927_v27  ;;  %v970_v26 = vld [vmem:[%s1443_s25 + $0xe0] sm:$0xf]  ;;  %v1084_v27 = vld [vmem:[%s1443_s25 + $0xe4] sm:$0xf0]  ;;  %v907_v32 = vor.u32 %v1068_v25, %v906_v24 }
  0x51   : > { %v971_v33 = vor.u32 %v1084_v27, %v970_v26 }
  0x5f   : > { %548 = vmatmul.bf16.gmra.mxu0 %v867_v36  ;;  %588 = vmatmul.bf16.gmra.mxu2 %v931_v37  ;;  %v914_v36 = vld [vmem:[%s1443_s25 + $0x70] sm:$0xf]  ;;  %v1070_v37 = vld [vmem:[%s1443_s25 + $0x74] sm:$0xf0] }
  0x60   : > { %637 = vmatmul.bf16.gmra.mxu1 %v871_v38  ;;  %677 = vmatmul.bf16.gmra.mxu3 %v935_v39  ;;  %v978_v38 = vld [vmem:[%s1443_s25 + $0xf0] sm:$0xf]  ;;  %v1086_v39 = vld [vmem:[%s1443_s25 + $0xf4] sm:$0xf0]  ;;  %v915_v44 = vor.u32 %v1070_v37, %v914_v36 }
  0x61   : > { %v979_v45 = vor.u32 %v1086_v39, %v978_v38 }
  0x6f   : > { %553 = vmatmul.bf16.gmra.mxu0 %v875_v48  ;;  %593 = vmatmul.bf16.gmra.mxu2 %v939_v49  ;;  %v1520_v48 = vld [vmem:[%s1625_s2] ss:$0 sm:$0xff] }
  0x70   : > { %642 = vmatmul.bf16.gmra.mxu1 %v879_v50  ;;  %682 = vmatmul.bf16.gmra.mxu3 %v943_v51 }
  0x7f   : > { %558 = vmatmul.bf16.gmra.mxu0 %v883_v60  ;;  %598 = vmatmul.bf16.gmra.mxu2 %v947_v61 }
  0x80   : > { %647 = vmatmul.bf16.gmra.mxu1 %v887_v62  ;;  %687 = vmatmul.bf16.gmra.mxu3 %v951_v63 }
  0x8f   : > { %563 = vmatmul.bf16.gmra.mxu0 %v891_v8  ;;  %603 = vmatmul.bf16.gmra.mxu2 %v955_v9 }
  0x90   : > { %652 = vmatmul.bf16.gmra.mxu1 %v895_v10  ;;  %692 = vmatmul.bf16.gmra.mxu3 %v959_v11 }
  0x9f   : > { %568 = vmatmul.bf16.gmra.mxu0 %v899_v20  ;;  %608 = vmatmul.bf16.gmra.mxu2 %v963_v21 }
  0xa0   : > { %657 = vmatmul.bf16.gmra.mxu1 %v903_v22  ;;  %697 = vmatmul.bf16.gmra.mxu3 %v967_v23 }
  0xaf   : > { %573 = vmatmul.bf16.gmra.mxu0 %v907_v32  ;;  %613 = vmatmul.bf16.gmra.mxu2 %v971_v33 }
  0xb0   : > { %662 = vmatmul.bf16.gmra.mxu1 %v911_v34  ;;  %702 = vmatmul.bf16.gmra.mxu3 %v975_v35 }
  0xbf   : > { %578 = vmatmul.bf16.gmra.mxu0 %v915_v44  ;;  %618 = vmatmul.bf16.gmra.mxu2 %v979_v45 }
  0xc0   : > { %667 = vmatmul.bf16.gmra.mxu1 %v919_v46  ;;  %707 = vmatmul.bf16.gmra.mxu3 %v983_v47 }
  0xcc   : > { %v544_v49 = vpop.f32.mrf.mxu0 }
  0xcd   : > { %v545_v50 = vadd.f32 %v1520_v48, %v544_v49  ;;  %v633_v51 = vpop.f32.mrf.mxu1 }
  0xcf   : > { %v634_v52 = vadd.f32 %v633_v51, %v545_v50 }
  0xd1   : > { %713 = vst [vmem:[%s1525_s17] sm:$0xff] %v634_v52 }
  0xd2   : > { %v584_v53 = vpop.f32.mrf.mxu2 }
  0xd3   : > { %v585_v54 = vadd.f32 %v1520_v48, %v584_v53  ;;  %v673_v55 = vpop.f32.mrf.mxu3 }
  0xd4   : > { %v546_v56 = vpop.f32.mrf.mxu0 }
  0xd5   : > { %v674_v57 = vadd.f32 %v673_v55, %v585_v54  ;;  %v547_v58 = vadd.f32 %v1520_v48, %v546_v56  ;;  %v635_v59 = vpop.f32.mrf.mxu1 }
  0xd7   : > { %729 = vst [vmem:[%s1525_s17 + $0x80] sm:$0xff] %v674_v57  ;;  %v636_v60 = vadd.f32 %v635_v59, %v547_v58 }
  0xd9   : > { %714 = vst [vmem:[%s1525_s17 + $0x8] sm:$0xff] %v636_v60 }
  0xda   : > { %v586_v61 = vpop.f32.mrf.mxu2 }
  0xdb   : > { %v587_v62 = vadd.f32 %v1520_v48, %v586_v61  ;;  %v675_v63 = vpop.f32.mrf.mxu3 }
  0xdc   : > { %v549_v0 = vpop.f32.mrf.mxu0 }
  0xdd   : > { %v676_v1 = vadd.f32 %v675_v63, %v587_v62  ;;  %v550_v2 = vadd.f32 %v1520_v48, %v549_v0  ;;  %v638_v3 = vpop.f32.mrf.mxu1 }
  0xdf   : > { %730 = vst [vmem:[%s1525_s17 + $0x88] sm:$0xff] %v676_v1  ;;  %v639_v4 = vadd.f32 %v638_v3, %v550_v2 }
  0xe1   : > { %715 = vst [vmem:[%s1525_s17 + $0x10] sm:$0xff] %v639_v4 }
  0xe2   : > { %v589_v5 = vpop.f32.mrf.mxu2 }
  0xe3   : > { %v590_v6 = vadd.f32 %v1520_v48, %v589_v5  ;;  %v678_v7 = vpop.f32.mrf.mxu3 }
  0xe4   : > { %v551_v8 = vpop.f32.mrf.mxu0 }
  0xe5   : > { %v679_v9 = vadd.f32 %v678_v7, %v590_v6  ;;  %v552_v10 = vadd.f32 %v1520_v48, %v551_v8  ;;  %v640_v11 = vpop.f32.mrf.mxu1 }
  0xe7   : > { %731 = vst [vmem:[%s1525_s17 + $0x90] sm:$0xff] %v679_v9  ;;  %v641_v12 = vadd.f32 %v640_v11, %v552_v10 }
  0xe9   : > { %716 = vst [vmem:[%s1525_s17 + $0x18] sm:$0xff] %v641_v12 }
  0xea   : > { %v591_v13 = vpop.f32.mrf.mxu2 }
  0xeb   : > { %v592_v14 = vadd.f32 %v1520_v48, %v591_v13  ;;  %v680_v15 = vpop.f32.mrf.mxu3 }
  0xec   : > { %v554_v16 = vpop.f32.mrf.mxu0 }
  0xed   : > { %v681_v17 = vadd.f32 %v680_v15, %v592_v14  ;;  %v555_v18 = vadd.f32 %v1520_v48, %v554_v16  ;;  %v643_v19 = vpop.f32.mrf.mxu1 }
  0xef   : > { %732 = vst [vmem:[%s1525_s17 + $0x98] sm:$0xff] %v681_v17  ;;  %v644_v20 = vadd.f32 %v643_v19, %v555_v18 }
  0xf1   : > { %717 = vst [vmem:[%s1525_s17 + $0x20] sm:$0xff] %v644_v20 }
  0xf2   : > { %v594_v21 = vpop.f32.mrf.mxu2 }
  0xf3   : > { %v595_v22 = vadd.f32 %v1520_v48, %v594_v21  ;;  %v683_v23 = vpop.f32.mrf.mxu3 }
  0xf4   : > { %v556_v24 = vpop.f32.mrf.mxu0 }
  0xf5   : > { %v684_v25 = vadd.f32 %v683_v23, %v595_v22  ;;  %v557_v26 = vadd.f32 %v1520_v48, %v556_v24  ;;  %v645_v27 = vpop.f32.mrf.mxu1 }
  0xf7   : > { %733 = vst [vmem:[%s1525_s17 + $0xa0] sm:$0xff] %v684_v25  ;;  %v646_v28 = vadd.f32 %v645_v27, %v557_v26 }
  0xf9   : > { %718 = vst [vmem:[%s1525_s17 + $0x28] sm:$0xff] %v646_v28 }
  0xfa   : > { %v596_v29 = vpop.f32.mrf.mxu2 }
  0xfb   : > { %v597_v30 = vadd.f32 %v1520_v48, %v596_v29  ;;  %v685_v31 = vpop.f32.mrf.mxu3 }
  0xfc   : > { %v559_v32 = vpop.f32.mrf.mxu0 }
  0xfd   : > { %v686_v33 = vadd.f32 %v685_v31, %v597_v30  ;;  %v560_v34 = vadd.f32 %v1520_v48, %v559_v32  ;;  %v648_v35 = vpop.f32.mrf.mxu1 }
  0xff   : > { %734 = vst [vmem:[%s1525_s17 + $0xa8] sm:$0xff] %v686_v33  ;;  %v649_v36 = vadd.f32 %v648_v35, %v560_v34 }
 0x101   : > { %719 = vst [vmem:[%s1525_s17 + $0x30] sm:$0xff] %v649_v36 }
 0x102   : > { %v599_v37 = vpop.f32.mrf.mxu2 }
 0x103   : > { %v600_v38 = vadd.f32 %v1520_v48, %v599_v37  ;;  %v688_v39 = vpop.f32.mrf.mxu3 }
 0x104   : > { %v561_v40 = vpop.f32.mrf.mxu0 }
 0x105   : > { %v689_v41 = vadd.f32 %v688_v39, %v600_v38  ;;  %v562_v42 = vadd.f32 %v1520_v48, %v561_v40  ;;  %v650_v43 = vpop.f32.mrf.mxu1 }
 0x107   : > { %735 = vst [vmem:[%s1525_s17 + $0xb0] sm:$0xff] %v689_v41  ;;  %v651_v44 = vadd.f32 %v650_v43, %v562_v42 }
 0x109   : > { %720 = vst [vmem:[%s1525_s17 + $0x38] sm:$0xff] %v651_v44 }
 0x10a   : > { %v601_v45 = vpop.f32.mrf.mxu2 }
 0x10b   : > { %v602_v46 = vadd.f32 %v1520_v48, %v601_v45  ;;  %v690_v47 = vpop.f32.mrf.mxu3 }
 0x10c   : > { %v564_v49 = vpop.f32.mrf.mxu0 }
 0x10d   : > { %v691_v50 = vadd.f32 %v690_v47, %v602_v46  ;;  %v565_v51 = vadd.f32 %v1520_v48, %v564_v49  ;;  %v653_v52 = vpop.f32.mrf.mxu1 }
 0x10f   : > { %736 = vst [vmem:[%s1525_s17 + $0xb8] sm:$0xff] %v691_v50  ;;  %v654_v53 = vadd.f32 %v653_v52, %v565_v51 }
 0x111   : > { %721 = vst [vmem:[%s1525_s17 + $0x40] sm:$0xff] %v654_v53 }
 0x112   : > { %v604_v54 = vpop.f32.mrf.mxu2 }
 0x113   : > { %v605_v55 = vadd.f32 %v1520_v48, %v604_v54  ;;  %v693_v56 = vpop.f32.mrf.mxu3 }
 0x114   : > { %v566_v57 = vpop.f32.mrf.mxu0 }
 0x115   : > { %v694_v58 = vadd.f32 %v693_v56, %v605_v55  ;;  %v567_v59 = vadd.f32 %v1520_v48, %v566_v57  ;;  %v655_v60 = vpop.f32.mrf.mxu1 }
 0x117   : > { %737 = vst [vmem:[%s1525_s17 + $0xc0] sm:$0xff] %v694_v58  ;;  %v656_v61 = vadd.f32 %v655_v60, %v567_v59 }
 0x119   : > { %722 = vst [vmem:[%s1525_s17 + $0x48] sm:$0xff] %v656_v61 }
 0x11a   : > { %v606_v62 = vpop.f32.mrf.mxu2 }
 0x11b   : > { %v607_v63 = vadd.f32 %v1520_v48, %v606_v62  ;;  %v695_v0 = vpop.f32.mrf.mxu3 }
 0x11c   : > { %v569_v1 = vpop.f32.mrf.mxu0 }
 0x11d   : > { %v696_v2 = vadd.f32 %v695_v0, %v607_v63  ;;  %v570_v3 = vadd.f32 %v1520_v48, %v569_v1  ;;  %v658_v4 = vpop.f32.mrf.mxu1 }
 0x11f   : > { %738 = vst [vmem:[%s1525_s17 + $0xc8] sm:$0xff] %v696_v2  ;;  %v659_v5 = vadd.f32 %v658_v4, %v570_v3 }
 0x121   : > { %723 = vst [vmem:[%s1525_s17 + $0x50] sm:$0xff] %v659_v5 }
 0x122   : > { %v609_v6 = vpop.f32.mrf.mxu2 }
 0x123   : > { %v610_v7 = vadd.f32 %v1520_v48, %v609_v6  ;;  %v698_v8 = vpop.f32.mrf.mxu3 }
 0x124   : > { %v571_v9 = vpop.f32.mrf.mxu0 }
 0x125   : > { %v699_v10 = vadd.f32 %v698_v8, %v610_v7  ;;  %v572_v11 = vadd.f32 %v1520_v48, %v571_v9  ;;  %v660_v12 = vpop.f32.mrf.mxu1 }
 0x127   : > { %739 = vst [vmem:[%s1525_s17 + $0xd0] sm:$0xff] %v699_v10  ;;  %v661_v13 = vadd.f32 %v660_v12, %v572_v11 }
 0x129   : > { %724 = vst [vmem:[%s1525_s17 + $0x58] sm:$0xff] %v661_v13 }
 0x12a   : > { %v611_v14 = vpop.f32.mrf.mxu2 }
 0x12b   : > { %v612_v15 = vadd.f32 %v1520_v48, %v611_v14  ;;  %v700_v16 = vpop.f32.mrf.mxu3 }
 0x12c   : > { %v574_v17 = vpop.f32.mrf.mxu0 }
 0x12d   : > { %v701_v18 = vadd.f32 %v700_v16, %v612_v15  ;;  %v575_v19 = vadd.f32 %v1520_v48, %v574_v17  ;;  %v663_v20 = vpop.f32.mrf.mxu1 }
 0x12f   : > { %740 = vst [vmem:[%s1525_s17 + $0xd8] sm:$0xff] %v701_v18  ;;  %v664_v21 = vadd.f32 %v663_v20, %v575_v19 }
 0x131   : > { %725 = vst [vmem:[%s1525_s17 + $0x60] sm:$0xff] %v664_v21 }
 0x132   : > { %v614_v22 = vpop.f32.mrf.mxu2 }
 0x133   : > { %v615_v23 = vadd.f32 %v1520_v48, %v614_v22  ;;  %v703_v24 = vpop.f32.mrf.mxu3 }
 0x134   : > { %v576_v25 = vpop.f32.mrf.mxu0 }
 0x135   : > { %v704_v26 = vadd.f32 %v703_v24, %v615_v23  ;;  %v577_v27 = vadd.f32 %v1520_v48, %v576_v25  ;;  %v665_v28 = vpop.f32.mrf.mxu1 }
 0x137   : > { %741 = vst [vmem:[%s1525_s17 + $0xe0] sm:$0xff] %v704_v26  ;;  %v666_v29 = vadd.f32 %v665_v28, %v577_v27 }
 0x139   : > { %726 = vst [vmem:[%s1525_s17 + $0x68] sm:$0xff] %v666_v29 }
 0x13a   : > { %v616_v30 = vpop.f32.mrf.mxu2 }
 0x13b   : > { %v617_v31 = vadd.f32 %v1520_v48, %v616_v30  ;;  %v705_v32 = vpop.f32.mrf.mxu3 }
 0x13c   : > { %v579_v33 = vpop.f32.mrf.mxu0 }
 0x13d   : > { %v706_v34 = vadd.f32 %v705_v32, %v617_v31  ;;  %v580_v35 = vadd.f32 %v1520_v48, %v579_v33  ;;  %v668_v36 = vpop.f32.mrf.mxu1 }
 0x13f   : > { %742 = vst [vmem:[%s1525_s17 + $0xe8] sm:$0xff] %v706_v34  ;;  %v669_v37 = vadd.f32 %v668_v36, %v580_v35 }
 0x141   : > { %727 = vst [vmem:[%s1525_s17 + $0x70] sm:$0xff] %v669_v37 }
 0x142   : > { %v619_v38 = vpop.f32.mrf.mxu2 }
 0x143   : > { %v620_v39 = vadd.f32 %v1520_v48, %v619_v38  ;;  %v708_v40 = vpop.f32.mrf.mxu3 }
 0x144   : > { %v581_v41 = vpop.f32.mrf.mxu0 }
 0x145   : > { %v709_v42 = vadd.f32 %v708_v40, %v620_v39  ;;  %v582_v43 = vadd.f32 %v1520_v48, %v581_v41  ;;  %v670_v44 = vpop.f32.mrf.mxu1 }
 0x147   : > { %743 = vst [vmem:[%s1525_s17 + $0xf0] sm:$0xff] %v709_v42  ;;  %v671_v45 = vadd.f32 %v670_v44, %v582_v43 }
 0x149   : > { %728 = vst [vmem:[%s1525_s17 + $0x78] sm:$0xff] %v671_v45 }
 0x14a   : > { %v621_v46 = vpop.f32.mrf.mxu2 }
 0x14b   : > { %v622_v47 = vadd.f32 %v1520_v48, %v621_v46  ;;  %v710_v49 = vpop.f32.mrf.mxu3 }
 0x14d   : > { %v711_v50 = vadd.f32 %v710_v49, %v622_v47 }
 0x14f   : > { %744 = vst [vmem:[%s1525_s17 + $0xf8] sm:$0xff] %v711_v50 }
 0x150   : > { %1271 = shalt.err (!%p1268_p10)
}
 0x151   : > { %s1321_s10 = smov 128   ;;  %s1322_s25 = smov 8  }
 0x152   : > { %1126 = dma.vmem_to_hbm [thread:$0]  (%p1409_p5), %s759_s28, 4096, %s761_s29, %s746_s16, %s1321_s10, %s1321_s10, %s1322_s25  }
 0x153 PF: > { %p1143_p11 = scmp.ge.s32.totalorder %s1314_s15, 2  ;;  %s775_s18 = sand.u32 1, %s1302_s12  }
 0x154   : > { %s776_s23 = scalar_lea.sflag [#allocation4], %s775_s18 }
 0x155   : > { %p1137_p12 = pnand %p1143_p11, %p1378_p6 }
 0x157   : > { %p1138_p13 = pneg %p1137_p12 }
 0x159   : > { %1297 = dma.done.wait (%p1138_p13), %s776_s23, 4096  }
 0x15a   : > { %1299 = vsyncadd (%p1138_p13), %s776_s23, 4294963200  ;;  %p17_p0 = scmp.ge.s32.totalorder %s1395_s26, 10   ;;  %s1632_s12 = smov %s1306_s13 }
 0x15b   : > { %s1633_s13 = smov %s1310_s14  ;;  %s1634_s14 = smov %s1405_s4 }
 0x15c   : > { %s1635_s15 = smov %s1395_s26  ;;  %19 = sbr.rel (!%p17_p0) target bundleno = 6 (0x6), region = 81 }
 0x161   :  { %782 = vsyncpa [#allocation3], 1 }
 0x162   :  { %784 = vsyncpa [#allocation3 + $0x1], 1 }
 0x163   :  { %785 = vsyncpa [#allocation6], 1 }
 0x164   :  { %786 = vsyncpa [#allocation4], 1 }
 0x165   :  { %788 = vsyncpa [#allocation4 + $0x1], 1 }

</bundles_post_ra>
